<compile_context>
chip_gen: v7x
topology: tpu7x:2x2x1
jax: 0.10.0
libtpu: 0.0.40
codegen_flags: <defaults>
</compile_context>

<pallas_src>
import functools

import jax
import jax.numpy as jnp
from jax.experimental import pallas as pl
from jax.experimental.pallas import tpu as pltpu


HIDDEN = 256     # hidden width of fc1/fc2 (matches the PyTorch module)
HEAD_PAD = 128   # lane-dense fused head width: col 0 = V, cols 1..A = A-head


def _round_up(x, m):
    return ((x + m - 1) // m) * m


def _dueling_dqn_kernel(x_ref, w1_ref, w2_ref, wh_ref, b_ref, q_ref, *, inv_a):
    # Packed biases (f32): row 0 = b1, row 1 = b2, row 2[:128] = head bias.
    b1 = b_ref[0:1, :]
    b2 = b_ref[1:2, :]
    bh = b_ref[2:3, :HEAD_PAD]

    x = x_ref[...]                                            # bf16 [T, S]

    # fc1 + relu (bf16 MXU, f32 accumulate, f32 epilogue)
    h1 = jnp.dot(x, w1_ref[...], preferred_element_type=jnp.float32) + b1
    h1 = jnp.maximum(h1, 0.0).astype(jnp.bfloat16)

    # fc2 + relu
    h2 = jnp.dot(h1, w2_ref[...], preferred_element_type=jnp.float32) + b2
    h2 = jnp.maximum(h2, 0.0).astype(jnp.bfloat16)

    # Fused V|A head: [T, 128]; col 0 = V, cols 1..A = advantage, rest exactly 0
    # (zero weight columns and zero bias entries).
    head = jnp.dot(h2, wh_ref[...], preferred_element_type=jnp.float32) + bh

    v = head[:, 0:1]                                          # [T, 1]
    # sum over the advantage columns == full-row sum minus the V column,
    # since all padded columns are exactly zero (avoids a [:,1:] lane slice).
    a_sum = jnp.sum(head, axis=1, keepdims=True) - v          # [T, 1]
    a_mean = a_sum * inv_a

    # q_pad[:, j] = head[:, j] + v - mean(a); the real Q values live in
    # columns 1..A and are sliced out in the wrapper.  Full 128-lane store.
    q_ref[...] = head + (v - a_mean)


def dueling_dqn_forward(x, kparams, action_dim, tile_b=1024):
    """x: [B, state_dim] float32.  kparams: packed bf16/f32 kernel params."""
    B, S = x.shape

    # Batch tile: multiple of 8 sublanes, capped at tile_b (sized for v7x VMEM).
    tile = min(tile_b, _round_up(B, 8))
    b_pad = _round_up(B, tile)

    x_pad = jnp.zeros((b_pad, S), jnp.bfloat16).at[:B].set(x.astype(jnp.bfloat16))

    weight_spec = lambda shape: pl.BlockSpec(shape, lambda i: (0, 0))

    q_pad = pl.pallas_call(
        functools.partial(_dueling_dqn_kernel, inv_a=1.0 / float(action_dim)),
        out_shape=jax.ShapeDtypeStruct((b_pad, HEAD_PAD), jnp.float32),
        grid=(b_pad // tile,),
        in_specs=[
            pl.BlockSpec((tile, S), lambda i: (i, 0)),     # x: tiled on batch
            weight_spec((S, HIDDEN)),                      # w1 (VMEM-resident)
            weight_spec((HIDDEN, HIDDEN)),                 # w2
            weight_spec((HIDDEN, HEAD_PAD)),               # fused V|A head
            weight_spec((3, HIDDEN)),                      # packed biases (f32)
        ],
        out_specs=pl.BlockSpec((tile, HEAD_PAD), lambda i: (i, 0)),
        compiler_params=pltpu.CompilerParams(
            dimension_semantics=("parallel",)),
    )(x_pad, kparams["w1"], kparams["w2"], kparams["wh"], kparams["b_pack"])

    # Real Q-values live at columns 1..1+A of the lane-dense output.
    return q_pad[:B, 1:1 + action_dim]


def init_params(key, state_dim, action_dim):
    """Master f32 parameters with the same shapes as the PyTorch module
    (already transposed to (in, out))."""
    keys = jax.random.split(key, 8)

    def lin(kw, kb, fan_in, fan_out):
        bound = 1.0 / jnp.sqrt(jnp.float32(fan_in))
        w = jax.random.uniform(kw, (fan_in, fan_out), jnp.float32, -bound, bound)
        b = jax.random.uniform(kb, (fan_out,), jnp.float32, -bound, bound)
        return w, b

    w1, b1 = lin(keys[0], keys[1], state_dim, HIDDEN)
    w2, b2 = lin(keys[2], keys[3], HIDDEN, HIDDEN)
    wv, bv = lin(keys[4], keys[5], HIDDEN, 1)
    wa, ba = lin(keys[6], keys[7], HIDDEN, action_dim)
    return dict(w1=w1, b1=b1, w2=w2, b2=b2, wv=wv, bv=bv, wa=wa, ba=ba)


def pack_params(p, action_dim):
    """Build kernel-side params: bf16 weights, fused+lane-padded head,
    single packed f32 bias array."""
    assert 1 + action_dim <= HEAD_PAD, "action_dim too large for 128-lane head"

    wh = jnp.zeros((HIDDEN, HEAD_PAD), jnp.float32)
    wh = wh.at[:, 0].set(p["wv"][:, 0])
    wh = wh.at[:, 1:1 + action_dim].set(p["wa"])

    b_pack = jnp.zeros((3, HIDDEN), jnp.float32)
    b_pack = b_pack.at[0, :].set(p["b1"])
    b_pack = b_pack.at[1, :].set(p["b2"])
    b_pack = b_pack.at[2, 0].set(p["bv"][0])
    b_pack = b_pack.at[2, 1:1 + action_dim].set(p["ba"])

    return dict(
        w1=p["w1"].astype(jnp.bfloat16),
        w2=p["w2"].astype(jnp.bfloat16),
        wh=wh.astype(jnp.bfloat16),
        b_pack=b_pack,
    )


def reference_forward(x, p):
    """Pure f32 reference of the PyTorch module."""
    h1 = jnp.maximum(x @ p["w1"] + p["b1"], 0.0)
    h2 = jnp.maximum(h1 @ p["w2"] + p["b2"], 0.0)
    v = h2 @ p["wv"] + p["bv"]
    a = h2 @ p["wa"] + p["ba"]
    return v + a - jnp.mean(a, axis=1, keepdims=True)


if __name__ == "__main__":
    B, STATE_DIM, ACTION_DIM = 2, 16, 8

    key = jax.random.PRNGKey(0)
    k_x, k_p = jax.random.split(key)

    x = jax.random.normal(k_x, (B, STATE_DIM), jnp.float32)
    params = init_params(k_p, STATE_DIM, ACTION_DIM)
    kparams = pack_params(params, ACTION_DIM)

    q = dueling_dqn_forward(x, kparams, ACTION_DIM)
    q = jax.block_until_ready(q)

    q_ref = reference_forward(x, params)
    assert q.shape == (B, ACTION_DIM)
    # bf16 matmul operands vs f32 reference -> loose-ish tolerance.
    assert jnp.allclose(q, q_ref, atol=5e-2, rtol=5e-2), "mismatch vs reference"

    print("KERNEL_OK")
</pallas_src>

<mosaic_0001>
module attributes {stable_mosaic.version = 11 : i64} {
  func.func @_dueling_dqn_kernel(%arg0: i32, %arg1: memref<8x16xbf16, #tpu.memory_space<vmem>>, %arg2: memref<16x256xbf16, #tpu.memory_space<vmem>>, %arg3: memref<256x256xbf16, #tpu.memory_space<vmem>>, %arg4: memref<256x128xbf16, #tpu.memory_space<vmem>>, %arg5: memref<3x256xf32, #tpu.memory_space<vmem>>, %arg6: memref<8x128xf32, #tpu.memory_space<vmem>>) attributes {dimension_semantics = [#tpu.dimension_semantics<parallel>], iteration_bounds = array<i64: 1>, scalar_prefetch = 0 : i64, scratch_operands = 0 : i64, tpu.core_type = #tpu.core_type<tc>, window_params = [{transform_indices = @transform_0, window_bounds = array<i64: 8, 16>}, {pipeline_mode = #tpu.pipeline_mode<synchronous>, transform_indices = @transform_1, window_bounds = array<i64: 16, 256>}, {pipeline_mode = #tpu.pipeline_mode<synchronous>, transform_indices = @transform_2, window_bounds = array<i64: 256, 256>}, {pipeline_mode = #tpu.pipeline_mode<synchronous>, transform_indices = @transform_3, window_bounds = array<i64: 256, 128>}, {pipeline_mode = #tpu.pipeline_mode<synchronous>, transform_indices = @transform_4, window_bounds = array<i64: 3, 256>}, {transform_indices = @transform_5, window_bounds = array<i64: 8, 128>}]} {
    %c0 = arith.constant 0 : index
    %c0_0 = arith.constant 0 : index
    %0 = vector.load %arg5[%c0, %c0_0] : memref<3x256xf32, #tpu.memory_space<vmem>>, vector<1x256xf32>
    %c1 = arith.constant 1 : index
    %c0_1 = arith.constant 0 : index
    %1 = vector.load %arg5[%c1, %c0_1] : memref<3x256xf32, #tpu.memory_space<vmem>>, vector<1x256xf32>
    %c2 = arith.constant 2 : index
    %c0_2 = arith.constant 0 : index
    %2 = vector.load %arg5[%c2, %c0_2] : memref<3x256xf32, #tpu.memory_space<vmem>>, vector<1x128xf32>
    %c0_3 = arith.constant 0 : index
    %c0_4 = arith.constant 0 : index
    %3 = vector.load %arg1[%c0_3, %c0_4] : memref<8x16xbf16, #tpu.memory_space<vmem>>, vector<8x16xbf16>
    %c0_5 = arith.constant 0 : index
    %c0_6 = arith.constant 0 : index
    %4 = vector.load %arg2[%c0_5, %c0_6] : memref<16x256xbf16, #tpu.memory_space<vmem>>, vector<16x256xbf16>
    %cst = arith.constant dense<0.000000e+00> : vector<8x256xf32>
    %5 = tpu.matmul %3, %4, %cst {dimension_numbers = #tpu.dot_dimension_numbers<[1], [0], [0], [1], [0, 0, 1, 1], [], []>} : vector<8x16xbf16>, vector<16x256xbf16>, vector<8x256xf32> -> vector<8x256xf32>
    %6 = vector.broadcast %0 : vector<1x256xf32> to vector<8x256xf32>
    %7 = arith.addf %5, %6 : vector<8x256xf32>
    %cst_7 = arith.constant 0.000000e+00 : f32
    %8 = vector.broadcast %cst_7 : f32 to vector<8x256xf32>
    %9 = arith.maximumf %7, %8 : vector<8x256xf32>
    %10 = arith.truncf %9 : vector<8x256xf32> to vector<8x256xbf16>
    %c0_8 = arith.constant 0 : index
    %c0_9 = arith.constant 0 : index
    %11 = vector.load %arg3[%c0_8, %c0_9] : memref<256x256xbf16, #tpu.memory_space<vmem>>, vector<256x256xbf16>
    %cst_10 = arith.constant dense<0.000000e+00> : vector<8x256xf32>
    %12 = tpu.matmul %10, %11, %cst_10 {dimension_numbers = #tpu.dot_dimension_numbers<[1], [0], [0], [1], [0, 0, 1, 1], [], []>} : vector<8x256xbf16>, vector<256x256xbf16>, vector<8x256xf32> -> vector<8x256xf32>
    %13 = vector.broadcast %1 : vector<1x256xf32> to vector<8x256xf32>
    %14 = arith.addf %12, %13 : vector<8x256xf32>
    %cst_11 = arith.constant 0.000000e+00 : f32
    %15 = vector.broadcast %cst_11 : f32 to vector<8x256xf32>
    %16 = arith.maximumf %14, %15 : vector<8x256xf32>
    %17 = arith.truncf %16 : vector<8x256xf32> to vector<8x256xbf16>
    %c0_12 = arith.constant 0 : index
    %c0_13 = arith.constant 0 : index
    %18 = vector.load %arg4[%c0_12, %c0_13] : memref<256x128xbf16, #tpu.memory_space<vmem>>, vector<256x128xbf16>
    %cst_14 = arith.constant dense<0.000000e+00> : vector<8x128xf32>
    %19 = tpu.matmul %17, %18, %cst_14 {dimension_numbers = #tpu.dot_dimension_numbers<[1], [0], [0], [1], [0, 0, 1, 1], [], []>} : vector<8x256xbf16>, vector<256x128xbf16>, vector<8x128xf32> -> vector<8x128xf32>
    %20 = vector.broadcast %2 : vector<1x128xf32> to vector<8x128xf32>
    %21 = arith.addf %19, %20 : vector<8x128xf32>
    %22 = vector.extract_strided_slice %21 {offsets = [0, 0], sizes = [8, 1], strides = [1, 1]} : vector<8x128xf32> to vector<8x1xf32>
    %cst_15 = arith.constant dense<0.000000e+00> : vector<8xf32>
    %23 = vector.multi_reduction <add>, %21, %cst_15 [1] : vector<8x128xf32> to vector<8xf32>
    %24 = vector.shape_cast %23 : vector<8xf32> to vector<8x1xf32>
    %25 = arith.subf %24, %22 : vector<8x1xf32>
    %cst_16 = arith.constant 1.250000e-01 : f32
    %26 = vector.broadcast %cst_16 : f32 to vector<8x1xf32>
    %27 = arith.mulf %25, %26 : vector<8x1xf32>
    %28 = arith.subf %22, %27 : vector<8x1xf32>
    %29 = vector.broadcast %28 : vector<8x1xf32> to vector<8x128xf32>
    %30 = arith.addf %21, %29 : vector<8x128xf32>
    %c0_17 = arith.constant 0 : index
    %c0_18 = arith.constant 0 : index
    %31 = vector.load %arg6[%c0_17, %c0_18] : memref<8x128xf32, #tpu.memory_space<vmem>>, vector<8x128xf32>
    tpu.vector_store %arg6[%c0_17, %c0_18], %30 {strides = array<i32>} : memref<8x128xf32, #tpu.memory_space<vmem>>, vector<8x128xf32>,
    return
  }
  func.func @transform_0(%arg0: i32) -> (i32, i32) {
    %c0_i32 = arith.constant 0 : i32
    %c0_i32_0 = arith.constant 0 : i32
    return %arg0, %c0_i32 : i32, i32
  }
  func.func @transform_1(%arg0: i32) -> (i32, i32) {
    %c0_i32 = arith.constant 0 : i32
    %c0_i32_0 = arith.constant 0 : i32
    %c0_i32_1 = arith.constant 0 : i32
    return %c0_i32, %c0_i32_0 : i32, i32
  }
  func.func @transform_2(%arg0: i32) -> (i32, i32) {
    %c0_i32 = arith.constant 0 : i32
    %c0_i32_0 = arith.constant 0 : i32
    %c0_i32_1 = arith.constant 0 : i32
    return %c0_i32, %c0_i32_0 : i32, i32
  }
  func.func @transform_3(%arg0: i32) -> (i32, i32) {
    %c0_i32 = arith.constant 0 : i32
    %c0_i32_0 = arith.constant 0 : i32
    %c0_i32_1 = arith.constant 0 : i32
    return %c0_i32, %c0_i32_0 : i32, i32
  }
  func.func @transform_4(%arg0: i32) -> (i32, i32) {
    %c0_i32 = arith.constant 0 : i32
    %c0_i32_0 = arith.constant 0 : i32
    %c0_i32_1 = arith.constant 0 : i32
    return %c0_i32, %c0_i32_0 : i32, i32
  }
  func.func @transform_5(%arg0: i32) -> (i32, i32) {
    %c0_i32 = arith.constant 0 : i32
    %c0_i32_0 = arith.constant 0 : i32
    return %arg0, %c0_i32 : i32, i32
  }
}

</mosaic_0001>

<bundles_post_ra>
// kernel: tpu_custom_call.1
= control target key start
LH: loop header
LB: loop body
LE: loop exit
PB: predicated region body
PF: predicated region fallthrough
CT: control target
= control target key end

     0   :  { %10 = vsyncpa [#allocation3], 0  ;;  %s987_s0 = inlined_call_operand.hbm [shape: bf16[8,16], index: 0, kind: input, shape index: {}]   ;;  %s988_s1 = inlined_call_operand.hbm [shape: bf16[16,256], index: 1, kind: input, shape index: {}]   ;;  %s989_s2 = inlined_call_operand.hbm [shape: bf16[256,256], index: 2, kind: input, shape index: {}]   ;;  %s990_s3 = inlined_call_operand.hbm [shape: bf16[256,128], index: 3, kind: input, shape index: {}]   ;;  %s991_s4 = inlined_call_operand.vmem [shape: f32[3,256], index: 4, kind: input, shape index: {}]   ;;  %s992_s5 = inlined_call_operand.hbm [shape: f32[8,128], index: 5, kind: output, shape index: {}]  }
   0x1   :  { %11 = vsyncpa [#allocation6], 0 }
   0x2   :  { %12 = vsyncpa [#allocation9], 0 }
   0x3   :  { %13 = vsyncpa [#allocation4], 0  ;;  %s872_s18 = smov [#allocation5]   ;;  %s754_s22 = scalar_lea.hbm %s988_s1, 256 }
   0x4   :  { %s29_s19 = sshll.u32 %s872_s18, 4  ;;  %p755_p0 = scmp.ne.s32.totalorder %s988_s1, %s754_s22  ;;  %s30_s19 = int_to_ptr.vmem [resolvable:$true] %s29_s19 }
   0x5   :  { %p758_p1 = scmp.lt.u32.totalorder %s754_s22, %s988_s1 }
   0x7   :  { %p760_p2 = pnand %p758_p1, %p755_p0 }
   0x9   :  { %763 = shalt.err (!%p760_p2)
}
   0xa   :  { %s764_s27 = scalar_lea.vmem %s30_s19, 256  ;;  %p769_p4 = scmp.lt.s32.totalorder %s30_s19, %s30_s19 }
   0xb   :  { %p765_p3 = scmp.ne.s32.totalorder %s30_s19, %s764_s27  ;;  %p770_p5 = scmp.lt.s32.totalorder %s764_s27, %s764_s27 }
   0xd   :  { %p771_p6 = por %p770_p5, %p769_p4 }
   0xf   :  { %p772_p7 = pnand %p771_p6, %p765_p3 }
  0x11   :  { %775 = shalt.err (!%p772_p7)
}
  0x12   :  { %s873_s28 = smov 128   ;;  %s874_s29 = smov 8  }
  0x13   :  { %35 = dma.hbm_to_vmem [thread:$0]  %s988_s1, 256, %s30_s19, [#allocation6], %s873_s28, %s873_s28, %s874_s29  }
  0x14   :  { %s875_s7 = smov [#allocation2]   ;;  %s876_s9 = smov [#allocation7]  }
  0x15   :  { %s20_s8 = sshll.u32 %s875_s7, 4  ;;  %s41_s10 = sshll.u32 %s876_s9, 4  ;;  %s21_s8 = int_to_ptr.vmem [resolvable:$true] %s20_s8  ;;  %s42_s10 = int_to_ptr.vmem [resolvable:$true] %s41_s10 }
  0x16   :  { %s776_s13 = scalar_lea.hbm %s987_s0, 64 }
  0x17   :  { %p777_p8 = scmp.ne.s32.totalorder %s987_s0, %s776_s13  ;;  %p780_p9 = scmp.lt.u32.totalorder %s776_s13, %s987_s0 }
  0x19   :  { %p782_p10 = pnand %p780_p9, %p777_p8 }
  0x1b   :  { %785 = shalt.err (!%p782_p10)
}
  0x1c   :  { %s786_s1 = scalar_lea.vmem %s21_s8, 64  ;;  %p791_p12 = scmp.lt.s32.totalorder %s21_s8, %s21_s8 }
  0x1d   :  { %p787_p11 = scmp.ne.s32.totalorder %s21_s8, %s786_s1  ;;  %p792_p13 = scmp.lt.s32.totalorder %s786_s1, %s786_s1 }
  0x1f   :  { %p793_p0 = por %p792_p13, %p791_p12 }
  0x21   :  { %p794_p1 = pnand %p793_p0, %p787_p11 }
  0x23   :  { %797 = shalt.err (!%p794_p1)
}
  0x24   :  { %23 = dma.hbm_to_vmem [thread:$0]  %s987_s0, 64, %s21_s8, [#allocation3]  }
  0x25   :  { %s798_s22 = scalar_lea.hbm %s989_s2, 4096 }
  0x26   :  { %p799_p2 = scmp.ne.s32.totalorder %s989_s2, %s798_s22  ;;  %p802_p3 = scmp.lt.u32.totalorder %s798_s22, %s989_s2 }
  0x28   :  { %p804_p4 = pnand %p802_p3, %p799_p2 }
  0x2a   :  { %807 = shalt.err (!%p804_p4)
}
  0x2b   :  { %s808_s27 = scalar_lea.vmem %s42_s10, 4096  ;;  %p813_p6 = scmp.lt.s32.totalorder %s42_s10, %s42_s10 }
  0x2c   :  { %p809_p5 = scmp.ne.s32.totalorder %s42_s10, %s808_s27  ;;  %p814_p7 = scmp.lt.s32.totalorder %s808_s27, %s808_s27 }
  0x2e   :  { %p815_p8 = por %p814_p7, %p813_p6 }
  0x30   :  { %p816_p9 = pnand %p815_p8, %p809_p5 }
  0x32   :  { %819 = shalt.err (!%p816_p9)
}
  0x33   :  { %47 = dma.hbm_to_vmem [thread:$0]  %s989_s2, 4096, %s42_s10, [#allocation6], %s873_s28, %s873_s28, %s874_s29  }
  0x34   :  { %s877_s6 = smov [#allocation8]   ;;  %s820_s11 = scalar_lea.hbm %s990_s3, 2048 }
  0x35   :  { %s53_s7 = sshll.u32 %s877_s6, 4  ;;  %p821_p10 = scmp.ne.s32.totalorder %s990_s3, %s820_s11  ;;  %s54_s7 = int_to_ptr.vmem [resolvable:$true] %s53_s7 }
  0x36   :  { %p824_p11 = scmp.lt.u32.totalorder %s820_s11, %s990_s3 }
  0x38   :  { %p826_p12 = pnand %p824_p11, %p821_p10 }
  0x3a   :  { %829 = shalt.err (!%p826_p12)
}
  0x3b   :  { %s830_s16 = scalar_lea.vmem %s54_s7, 2048  ;;  %p835_p0 = scmp.lt.s32.totalorder %s54_s7, %s54_s7 }
  0x3c   :  { %p831_p13 = scmp.ne.s32.totalorder %s54_s7, %s830_s16  ;;  %p836_p1 = scmp.lt.s32.totalorder %s830_s16, %s830_s16 }
  0x3e   :  { %p837_p2 = por %p836_p1, %p835_p0 }
  0x40   :  { %p838_p3 = pnand %p837_p2, %p831_p13 }
  0x42   :  { %841 = shalt.err (!%p838_p3)
}
  0x43   :  { %s878_s2 = smov 64   ;;  %s879_s28 = smov 4  }
  0x44   :  { %59 = dma.hbm_to_vmem [thread:$0]  %s990_s3, 2048, %s54_s7, [#allocation9], %s878_s2, %s878_s2, %s879_s28  }
  0x45   :  { %864 = dma.done.wait [#allocation3], 64  }
  0x46   :  { %865 = vsyncadd [#allocation3], 4294967232 }
  0x47   :  { %866 = dma.done.wait [#allocation6], 4352  }
  0x48   :  { %867 = vsyncadd [#allocation6], 4294962944 }
  0x49   :  { %868 = dma.done.wait [#allocation9], 2048  }
  0x4a   :  { %869 = vsyncadd [#allocation9], 4294965248  ;;  %v880_v0 = vmov 0   ;;  %v687_v1 = vld [vmem:[#allocation5 + $0x4] ss:$8 sps:$4 sm:$0xff]   ;;  %vm103_vm0 = vcmask 130048   ;;  %v83_v48 = vlaneseq }
  0x4b   :  { %139 = vmatprep.mubr.bf16.mxu0 %v880_v0  ;;  %686 = vset.pattern.permute.xlu0 %v880_v0  ;;  %v689_v2 = vld [vmem:[#allocation5] ss:$8 sps:$4 sm:$0xff]   ;;  %v79_v3 = vld [vmem:[#allocation2] sm:$0xf]  ;;  %v692_v5 = vld [vmem:[#allocation7] ss:$8 sps:$4 sm:$0xff]  }
  0x4c   :  { %107 = vmatprep.subr.bf16.mxu0 %v687_v1  ;;  %v690_v4 = vld [vmem:[#allocation7 + $0x4] ss:$8 sps:$4 sm:$0xff]   ;;  %v693_v6 = vld [vmem:[#allocation7 + $0x14] ss:$8 sps:$4 sm:$0xff]   ;;  %v695_v7 = vld [vmem:[#allocation7 + $0x10] ss:$8 sps:$4 sm:$0xff]  }
  0x4d   :  { %108 = vmatpush1.bf16.msra.mxu0 %v689_v2  ;;  %355 = vmatprep.subr.bf16.mxu1 %v690_v4  ;;  %v696_v8 = vld [vmem:[#allocation7 + $0x24] ss:$8 sps:$4 sm:$0xff]   ;;  %v698_v9 = vld [vmem:[#allocation7 + $0x20] ss:$8 sps:$4 sm:$0xff]   ;;  %v699_v10 = vld [vmem:[#allocation7 + $0x34] ss:$8 sps:$4 sm:$0xff]  }
  0x4e   :  { %356 = vmatpush1.bf16.msra.mxu1 %v692_v5  ;;  %v701_v11 = vld [vmem:[#allocation7 + $0x30] ss:$8 sps:$4 sm:$0xff]   ;;  %v702_v12 = vld [vmem:[#allocation7 + $0x44] ss:$8 sps:$4 sm:$0xff]   ;;  %v704_v13 = vld [vmem:[#allocation7 + $0x40] ss:$8 sps:$4 sm:$0xff]  }
  0x4f   :  { %357 = vmatprep.subr.bf16.mxu1 %v693_v6  ;;  %v705_v14 = vld [vmem:[#allocation7 + $0x54] ss:$8 sps:$4 sm:$0xff]   ;;  %v707_v15 = vld [vmem:[#allocation7 + $0x50] ss:$8 sps:$4 sm:$0xff]   ;;  %v708_v16 = vld [vmem:[#allocation7 + $0x64] ss:$8 sps:$4 sm:$0xff]  }
  0x50   :  { %604 = vmatmul.mubr.msk.bf16.vlgmr.msra.gmra.mrb[0].mxu0 %vm103_vm0, %v79_v3  ;;  %v710_v17 = vld [vmem:[#allocation7 + $0x60] ss:$8 sps:$4 sm:$0xff]   ;;  %v711_v18 = vld [vmem:[#allocation7 + $0x74] ss:$8 sps:$4 sm:$0xff]   ;;  %v713_v19 = vld [vmem:[#allocation7 + $0x70] ss:$8 sps:$4 sm:$0xff]  }
  0x51   :  { %v714_v20 = vld [vmem:[#allocation7 + $0x84] ss:$8 sps:$4 sm:$0xff]   ;;  %v716_v21 = vld [vmem:[#allocation7 + $0x80] ss:$8 sps:$4 sm:$0xff]   ;;  %v717_v22 = vld [vmem:[#allocation7 + $0x94] ss:$8 sps:$4 sm:$0xff]  }
  0x52   :  { %358 = vmatpush1.bf16.msra.mxu1 %v695_v7  ;;  %v719_v23 = vld [vmem:[#allocation7 + $0x90] ss:$8 sps:$4 sm:$0xff]   ;;  %v720_v24 = vld [vmem:[#allocation7 + $0xa4] ss:$8 sps:$4 sm:$0xff]   ;;  %v722_v25 = vld [vmem:[#allocation7 + $0xa0] ss:$8 sps:$4 sm:$0xff]  }
  0x53   :  { %359 = vmatprep.subr.bf16.mxu1 %v696_v8  ;;  %v723_v26 = vld [vmem:[#allocation7 + $0xb4] ss:$8 sps:$4 sm:$0xff]   ;;  %v725_v27 = vld [vmem:[#allocation7 + $0xb0] ss:$8 sps:$4 sm:$0xff]   ;;  %v726_v28 = vld [vmem:[#allocation7 + $0xc4] ss:$8 sps:$4 sm:$0xff]  }
  0x54   :  { %v728_v29 = vld [vmem:[#allocation7 + $0xc0] ss:$8 sps:$4 sm:$0xff]   ;;  %v729_v30 = vld [vmem:[#allocation7 + $0xd4] ss:$8 sps:$4 sm:$0xff]   ;;  %v731_v31 = vld [vmem:[#allocation7 + $0xd0] ss:$8 sps:$4 sm:$0xff]  }
  0x55   :  { %v732_v32 = vld [vmem:[#allocation7 + $0xe4] ss:$8 sps:$4 sm:$0xff]   ;;  %v734_v33 = vld [vmem:[#allocation7 + $0xe0] ss:$8 sps:$4 sm:$0xff]   ;;  %v735_v34 = vld [vmem:[#allocation7 + $0xf4] ss:$8 sps:$4 sm:$0xff]  }
  0x56   :  { %360 = vmatpush1.bf16.msra.mxu1 %v698_v9  ;;  %v737_v35 = vld [vmem:[#allocation7 + $0xf0] ss:$8 sps:$4 sm:$0xff]   ;;  %v738_v36 = vld [vmem:[#allocation8 + $0x40] sm:$0xff]   ;;  %v740_v38 = vld [vmem:[#allocation8 + $0x48] sm:$0xff]   ;;  %v84_v49 = vshrl.u32 %v83_v48, 7  ;;  %s881_s21 = smov [#allocation10]  }
  0x57   :  { %361 = vmatprep.subr.bf16.mxu1 %v699_v10  ;;  %v739_v37 = vld [vmem:[#allocation8] sm:$0xff]   ;;  %654 = vmatprep.subr.bf16.mxu0 %v738_v36  ;;  %v741_v39 = vld [vmem:[#allocation8 + $0x8] sm:$0xff]   ;;  %v742_v40 = vld [vmem:[#allocation8 + $0x50] sm:$0xff]   ;;  %s590_s22 = sshll.u32 %s881_s21, 4  ;;  %s591_s22 = int_to_ptr.vmem [resolvable:$true] %s590_s22 }
  0x58   :  { %655 = vmatpush3.bf16.msra.mxu0 %v739_v37  ;;  %v743_v41 = vld [vmem:[#allocation8 + $0x10] sm:$0xff]   ;;  %v744_v42 = vld [vmem:[#allocation8 + $0x58] sm:$0xff]   ;;  %v746_v44 = vld [vmem:[#allocation8 + $0x60] sm:$0xff]   ;;  %v85_v50 = vsub.s32 0, %v84_v49  ;;  %v89_v52 = vsub.s32 1, %v84_v49  ;;  %s842_s23 = scalar_lea.vmem %s591_s22, 128  ;;  %p847_p5 = scmp.lt.s32.totalorder %s591_s22, %s591_s22 }
  0x59   :  { %656 = vmatprep.subr.bf16.mxu0 %v740_v38  ;;  %v745_v43 = vld [vmem:[#allocation8 + $0x18] sm:$0xff]   ;;  %v747_v45 = vld [vmem:[#allocation8 + $0x20] sm:$0xff]   ;;  %v748_v46 = vld [vmem:[#allocation8 + $0x68] sm:$0xff]   ;;  %p843_p4 = scmp.ne.s32.totalorder %s591_s22, %s842_s23  ;;  %p848_p6 = scmp.lt.s32.totalorder %s842_s23, %s842_s23 }
  0x5a   :  { %362 = vmatpush1.bf16.msra.mxu1 %v701_v11  ;;  %v749_v47 = vld [vmem:[#allocation8 + $0x28] sm:$0xff]   ;;  %v750_v1 = vld [vmem:[#allocation8 + $0x70] sm:$0xff]   ;;  %v752_v3 = vld [vmem:[#allocation8 + $0x78] sm:$0xff]  }
  0x5b   :  { %363 = vmatprep.subr.bf16.mxu1 %v702_v12  ;;  %v75_v51 = vld [vmem:[%s991_s4] ss:$4 sm:$0x3]  ;;  %v751_v2 = vld [vmem:[#allocation8 + $0x30] sm:$0xff]   ;;  %v753_v4 = vld [vmem:[#allocation8 + $0x38] sm:$0xff]   ;;  %p849_p7 = por %p848_p6, %p847_p5 }
  0x5c   :  { %657 = vmatpush3.bf16.msra.mxu0 %v741_v39  ;;  %v86_v53 = vrot.slane %v75_v51, %v85_v50  ;;  %v90_v54 = vrot.slane %v75_v51, %v89_v52  ;;  %v601_v5 = vld [vmem:[%s991_s4 + $0x1] ss:$4 sm:$0x3] }
  0x5d   :  { %658 = vmatprep.subr.bf16.mxu0 %v742_v40  ;;  %v188_v6 = vrot.slane %v601_v5, %v85_v50  ;;  %v192_v7 = vrot.slane %v601_v5, %v89_v52  ;;  %p850_p8 = pnand %p849_p7, %p843_p4 }
  0x5e   :  { %364 = vmatpush1.bf16.msra.mxu1 %v704_v13 }
  0x5f   :  { %365 = vmatprep.subr.bf16.mxu1 %v705_v14 }
  0x60   :  { %659 = vmatpush3.bf16.msra.mxu0 %v743_v41 }
  0x61   :  { %660 = vmatprep.subr.bf16.mxu0 %v744_v42 }
  0x62   :  { %366 = vmatpush1.bf16.msra.mxu1 %v707_v15 }
  0x63   :  { %367 = vmatprep.subr.bf16.mxu1 %v708_v16 }
  0x64   :  { %661 = vmatpush3.bf16.msra.mxu0 %v745_v43 }
  0x65   :  { %662 = vmatprep.subr.bf16.mxu0 %v746_v44 }
  0x66   :  { %368 = vmatpush1.bf16.msra.mxu1 %v710_v17 }
  0x67   :  { %369 = vmatprep.subr.bf16.mxu1 %v711_v18 }
  0x68   :  { %663 = vmatpush3.bf16.msra.mxu0 %v747_v45 }
  0x69   :  { %664 = vmatprep.subr.bf16.mxu0 %v748_v46 }
  0x6a   :  { %370 = vmatpush1.bf16.msra.mxu1 %v713_v19  ;;  %v637_v19 = vld [vmem:[%s991_s4 + $0x2] ss:$0 sm:$0xff] }
  0x6b   :  { %371 = vmatprep.subr.bf16.mxu1 %v714_v20 }
  0x6c   :  { %665 = vmatpush3.bf16.msra.mxu0 %v749_v47 }
  0x6d   :  { %666 = vmatprep.subr.bf16.mxu0 %v750_v1 }
  0x6e   :  { %372 = vmatpush1.bf16.msra.mxu1 %v716_v21 }
  0x6f   :  { %373 = vmatprep.subr.bf16.mxu1 %v717_v22 }
  0x70   :  { %667 = vmatpush3.bf16.msra.mxu0 %v751_v2 }
  0x71   :  { %668 = vmatprep.subr.bf16.mxu0 %v752_v3 }
  0x72   :  { %374 = vmatpush1.bf16.msra.mxu1 %v719_v23 }
  0x73   :  { %375 = vmatprep.subr.bf16.mxu1 %v720_v24 }
  0x74   :  { %669 = vmatpush3.bf16.msra.mxu0 %v753_v4 }
  0x76   :  { %376 = vmatpush1.bf16.msra.mxu1 %v722_v25 }
  0x77   :  { %377 = vmatprep.subr.bf16.mxu1 %v723_v26 }
  0x7a   :  { %378 = vmatpush1.bf16.msra.mxu1 %v725_v27 }
  0x7b   :  { %379 = vmatprep.subr.bf16.mxu1 %v726_v28 }
  0x7e   :  { %380 = vmatpush1.bf16.msra.mxu1 %v728_v29 }
  0x7f   :  { %381 = vmatprep.subr.bf16.mxu1 %v729_v30 }
  0x82   :  { %382 = vmatpush1.bf16.msra.mxu1 %v731_v31 }
  0x83   :  { %383 = vmatprep.subr.bf16.mxu1 %v732_v32 }
  0x86   :  { %384 = vmatpush1.bf16.msra.mxu1 %v734_v33 }
  0x87   :  { %385 = vmatprep.subr.bf16.mxu1 %v735_v34 }
  0x8a   :  { %386 = vmatpush1.bf16.msra.mxu1 %v737_v35 }
 0x123   :  { %v141_v55 = vpop.f32.mrb[0].mxu0 }
 0x124   :  { %v142_v56 = vadd.f32 %v141_v55, %v86_v53  ;;  %v143_v57 = vpop.f32.mrb[1].mxu0 }
 0x125   :  { %v144_v58 = vadd.f32 %v143_v57, %v90_v54  ;;  %v145_v59 = vpop.f32.mrb[2].mxu0 }
 0x126   :  { %v148_v60 = vmax.f32 %v142_v56, 0.0  ;;  %v146_v61 = vpop.f32.mrb[3].mxu0 }
 0x127   :  { %v149_v62 = vmax.f32 %v144_v58, 0.0 }
 0x128   :  { %v150_v0 = vpack.c.bf16 %v148_v60, %v148_v60 }
 0x129   :  { %v151_v63 = vpack.c.bf16 %v149_v62, %v149_v62 }
 0x12b   :  { %387 = vmatprep.mubr.bf16.mxu1 %v151_v63 }
 0x12c   :  { %388 = vmatmul.mubr.bf16.vlgmr.msra.gmra.mrb[0].mxu1 %v150_v0 }
 0x1ff   :  { %v389_v8 = vpop.f32.mrb[0].mxu1 }
 0x200   :  { %v390_v9 = vadd.f32 %v389_v8, %v188_v6  ;;  %v391_v10 = vpop.f32.mrb[1].mxu1 }
 0x201   :  { %v392_v11 = vadd.f32 %v391_v10, %v192_v7  ;;  %v393_v12 = vpop.f32.mrb[2].mxu1 }
 0x202   :  { %v396_v13 = vmax.f32 %v390_v9, 0.0  ;;  %v394_v14 = vpop.f32.mrb[3].mxu1 }
 0x203   :  { %v397_v15 = vmax.f32 %v392_v11, 0.0 }
 0x204   :  { %v398_v17 = vpack.c.bf16 %v396_v13, %v396_v13 }
 0x205   :  { %v399_v16 = vpack.c.bf16 %v397_v15, %v397_v15 }
 0x207   :  { %564 = vmatprep.mubr.bf16.mxu0 %v399_v16 }
 0x208   :  { %565 = vmatmul.mubr.bf16.vlgmr.msra.gmra.mrb[4].mxu0 %v398_v17 }
 0x2db   :  { %v670_v18 = vpop.f32.mrb[4].mxu0 }
 0x2dc   :  { %v671_v20 = vpop.f32.mrb[5].mxu0 }
 0x2dd   :  { %v672_v21 = vadd.f32 %v671_v20, %v670_v18  ;;  %v673_v22 = vpop.f32.mrb[6].mxu0 }
 0x2de   :  { %v674_v23 = vpop.f32.mrb[7].mxu0 }
 0x2df   :  { %v567_v24 = vadd.f32 %v672_v21, %v637_v19 }
 0x2e1   :  { %572 = vadd.xlane.f32.xlu0 %v567_v24 }
 0x36e   :  { %v573_v25 = vpop.xlane.xlu0 %572 }
 0x36f   :  { %v574_v26 = vsub.f32 %v573_v25, %v567_v24 }
 0x371   :  { %v575_v27 = vmul.f32 0.125, %v574_v26 }
 0x373   :  { %v576_v28 = vsub.f32 %v567_v24, %v575_v27 }
 0x375   :  { %579 = vperm.xlu0 %686, %v576_v28  }
 0x3f4   :  { %v580_v29 = vpop.permute.xlu0 %579 }
 0x3f5   :  { %v582_v30 = vadd.f32 %v580_v29, %v567_v24 }
 0x3f7   :  { %583 = vst [vmem:[#allocation10] sm:$0xff] %v582_v30 }
 0x3f8   :  { %853 = shalt.err (!%p850_p8)
}
 0x3f9   :  { %s854_s25 = scalar_lea.hbm %s992_s5, 128 }
 0x3fa   :  { %p855_p9 = scmp.ne.s32.totalorder %s992_s5, %s854_s25  ;;  %p858_p10 = scmp.lt.u32.totalorder %s854_s25, %s992_s5 }
 0x3fc   :  { %p860_p11 = pnand %p858_p10, %p855_p9 }
 0x3fe   :  { %863 = shalt.err (!%p860_p11)
}
 0x3ff   :  { %593 = dma.vmem_to_hbm [thread:$0]  %s591_s22, 128, %s992_s5, [#allocation4]  }
 0x400   :  { %870 = dma.done.wait [#allocation4], 128  }
 0x401   :  { %871 = vsyncadd [#allocation4], 4294967168 }
 0x402   :  { %597 = vsyncpa [#allocation3], 1 }
 0x403   :  { %598 = vsyncpa [#allocation6], 1 }
 0x404   :  { %599 = vsyncpa [#allocation9], 1 }
 0x405   :  { %600 = vsyncpa [#allocation4], 1 }

</bundles_post_ra>
